<compile_context>
chip_gen: v5e
topology: v5e:2x2
jax: 0.10.0
libtpu: 0.0.40
codegen_flags: <defaults>
</compile_context>

<pallas_src>
import functools

import jax
import jax.numpy as jnp
from jax.experimental import pallas as pl
from jax.experimental.pallas import tpu as pltpu


# Pad-row sentinel: |m - 1e19| summed over C (<= ~128 terms) stays finite in f32
# and exp(-d) underflows to exactly 0 for padded partners.
_BIG = 1e19


def _round_up(n, m):
    return ((n + m - 1) // m) * m


def _vmem_capacity_bytes():
    """Per-core VMEM capacity; conservative (v7x-safe) fallback if unavailable."""
    try:
        info = pltpu.get_tpu_info()
        for attr in ("vmem_capacity_bytes", "vmem_size_bytes", "vmem_bytes"):
            v = getattr(info, attr, None)
            if v:
                return int(v)
    except Exception:
        pass
    return 64 * 1024 * 1024


# --------------- Stage 1: M = x @ T.reshape(A, B*C) ------------------------------
def _project_kernel(x_ref, t_ref, m_ref):
    m_ref[...] = jnp.dot(x_ref[...], t_ref[...],
                         preferred_element_type=jnp.float32)


# --------------- Stage 2: out[i,b] = sum_j exp(-sum_c |M[i,bc]-M[j,bc]|) - 1 -----
def _pairwise_kernel(mi_ref, mjt_ref, out_ref, acc_ref, *, n_groups, group_size):
    j = pl.program_id(1)

    @pl.when(j == 0)
    def _init():
        acc_ref[...] = jnp.zeros_like(acc_ref)

    mi = mi_ref[...]          # (TI, BC)   lanes = BC
    mjt = mjt_ref[...]        # (BC, TJ)   lanes = TJ
    ti = mi.shape[0]
    tj = mjt.shape[1]

    # Lane-dense pairwise |.|: (TI, BC, TJ) with the partner index on the 128-lane
    # axis.  mjt broadcasts along TI for free; mi needs a small one-off relayout
    # (TI*BC elements, ~1/TJ of the main work).
    diff = jnp.abs(mi[:, :, None] - mjt[None, :, :])

    # Per-group C-sum: split the sublane-tiled BC axis into (B, C) via a row-major
    # view (C == 8 aligns with the sublane tile) and reduce the C axis.
    d = jnp.sum(diff.reshape(ti * n_groups, group_size, tj), axis=1)   # (TI*B, TJ)

    c = jnp.exp(-d)           # EUP, fully lane-dense (TJ >= 128 lanes)

    # Partial j-sum for this tile (cross-lane reduce), accumulated across j tiles.
    acc_ref[...] += jnp.sum(c.reshape(ti, n_groups, tj), axis=2)       # (TI, B)

    @pl.when(j == pl.num_programs(1) - 1)
    def _finish():
        # c[i, i] == exp(0) == 1 exactly and padded partners contribute exactly 0,
        # so subtracting 1.0 reproduces the reference's diagonal removal bit-exactly.
        out_ref[...] = acc_ref[...] - 1.0


def minibatch_discrimination(x, T, *, tile=None):
    """x: (N, A) f32, T: (A, B, C) f32  ->  (N, B) f32."""
    N, A = x.shape
    A2, B, C = T.shape
    assert A == A2
    BC = B * C

    x = x.astype(jnp.float32)
    t2d = T.reshape(A, BC).astype(jnp.float32)       # glue reshape in plain JAX

    # Generation-aware tiling: the (TI, BC, TJ) f32 diff block dominates VMEM.
    # Keep it ~8 MiB on v7x (64 MiB/TC) and ~32 MiB on v5e/v6e (128 MiB).  tile is
    # always a multiple of 128 so every stage-2 block is (8, 128)-aligned and the
    # exp/reduce tail stays lane-dense.
    cap = _vmem_capacity_bytes()
    if tile is None:
        tile = 256 if cap >= 96 * 1024 * 1024 else 128
    tile = max(128, _round_up(int(tile), 128))

    n_pad = _round_up(N, tile)
    n_tiles = n_pad // tile
    if n_pad != N:
        x = jnp.pad(x, ((0, n_pad - N), (0, 0)))

    # ---- Stage 1: M = x @ T2d (single launch, large row tiles) ------------------
    m = pl.pallas_call(
        _project_kernel,
        out_shape=jax.ShapeDtypeStruct((n_pad, BC), jnp.float32),
        grid=(n_tiles,),
        in_specs=[
            pl.BlockSpec((tile, A), lambda i: (i, 0)),
            pl.BlockSpec((A, BC), lambda i: (0, 0)),
        ],
        out_specs=pl.BlockSpec((tile, BC), lambda i: (i, 0)),
        compiler_params=pltpu.CompilerParams(
            dimension_semantics=("parallel",)),
    )(x, t2d)

    # Padded rows -> BIG so every padded partner contributes exp(-huge) == 0 in
    # stage 2 (removes the per-step iota/where mask).  Tiny XLA glue on (n_pad, BC).
    if n_pad != N:
        m = jnp.where(jnp.arange(n_pad, dtype=jnp.int32)[:, None] < N, m, _BIG)
    mt = m.T                                          # (BC, n_pad) for the j side

    # Per-step VMEM estimate (generous): diff slab + d/exp temporaries +
    # double-buffered tiles + accumulator/output.
    est = 4 * (tile * tile * BC
               + 2 * tile * tile * B
               + 4 * tile * BC
               + 2 * BC * tile
               + 4 * tile * B)
    vmem_limit = int(min((cap * 3) // 4, max(2 * est, 32 * 1024 * 1024)))
    vmem_limit = max(vmem_limit, est + (2 << 20))

    # ---- Stage 2: pairwise exp(-L1) scores, tiled over (i, j) with accumulator --
    # TODO(synk): on v7x, try pltpu.CORE_PARALLEL on the i axis (and confirm in the
    # lowered MLIR that the grid actually splits across the 2 TensorCores).
    kernel = functools.partial(_pairwise_kernel, n_groups=B, group_size=C)
    out = pl.pallas_call(
        kernel,
        out_shape=jax.ShapeDtypeStruct((n_pad, B), jnp.float32),
        grid=(n_tiles, n_tiles),
        in_specs=[
            pl.BlockSpec((tile, BC), lambda i, j: (i, 0)),   # M row tile (i side)
            pl.BlockSpec((BC, tile), lambda i, j: (0, j)),   # M^T column tile (j side)
        ],
        out_specs=pl.BlockSpec((tile, B), lambda i, j: (i, 0)),
        scratch_shapes=[pltpu.VMEM((tile, B), jnp.float32)],
        compiler_params=pltpu.CompilerParams(
            dimension_semantics=("parallel", "arbitrary"),
            vmem_limit_bytes=vmem_limit),
    )(m, mt)

    return out[:N]


def _reference(x, T):
    A, B, C = T.shape
    N = x.shape[0]
    m = jnp.dot(x, T.reshape(A, B * C),
                precision=jax.lax.Precision.HIGHEST).reshape(N, B, C)
    d = jnp.sum(jnp.abs(m[:, None, :, :] - m[None, :, :, :]), axis=3)   # (N, N, B)
    c = jnp.exp(-d)
    scores = jnp.sum(c, axis=1)
    diag = c[jnp.arange(N), jnp.arange(N)]
    return scores - diag


if __name__ == "__main__":
    # Shapes consistent with the module: A=32 features, B=16 output kernels,
    # C=8 kernel dimension.
    A, B, C = 32, 16, 8

    key = jax.random.PRNGKey(0)
    kx1, kx2, kt = jax.random.split(key, 3)

    # Deterministic parameter init matching reset_parameters():
    # uniform(-1/sqrt(A), 1/sqrt(A)) over shape (A, B, C).
    stddev = 1.0 / jnp.sqrt(jnp.float32(A))
    T = jax.random.uniform(kt, (A, B, C), dtype=jnp.float32,
                           minval=-stddev, maxval=stddev)

    # Small-batch check (single grid tile; exercises the BIG-padded rows).
    N1 = 8
    x1 = jax.random.normal(kx1, (N1, A), dtype=jnp.float32)
    out1 = jax.block_until_ready(minibatch_discrimination(x1, T))
    ref1 = jax.block_until_ready(_reference(x1, T))
    assert out1.shape == (N1, B)
    assert jnp.allclose(out1, ref1, atol=2e-3, rtol=2e-3), "mismatch vs reference (N=8)"

    # Multi-tile check: forces the (i, j) grid with the per-i accumulator + padding.
    N2 = 160
    x2 = jax.random.normal(kx2, (N2, A), dtype=jnp.float32)
    out2 = jax.block_until_ready(minibatch_discrimination(x2, T, tile=128))
    ref2 = jax.block_until_ready(_reference(x2, T))
    assert out2.shape == (N2, B)
    assert jnp.allclose(out2, ref2, atol=2e-3, rtol=2e-3), "mismatch vs reference (N=160)"

    print("KERNEL_OK")
</pallas_src>

<mosaic_0001>
module attributes {stable_mosaic.version = 11 : i64} {
  func.func @_project_kernel(%arg0: i32, %arg1: memref<128x32xf32, #tpu.memory_space<vmem>>, %arg2: memref<32x128xf32, #tpu.memory_space<vmem>>, %arg3: memref<128x128xf32, #tpu.memory_space<vmem>>) attributes {dimension_semantics = [#tpu.dimension_semantics<parallel>], iteration_bounds = array<i64: 1>, scalar_prefetch = 0 : i64, scratch_operands = 0 : i64, tpu.core_type = #tpu.core_type<tc>, window_params = [{transform_indices = @transform_0, window_bounds = array<i64: 128, 32>}, {pipeline_mode = #tpu.pipeline_mode<synchronous>, transform_indices = @transform_1, window_bounds = array<i64: 32, 128>}, {transform_indices = @transform_2, window_bounds = array<i64: 128, 128>}]} {
    %c0 = arith.constant 0 : index
    %c0_0 = arith.constant 0 : index
    %0 = vector.load %arg1[%c0, %c0_0] : memref<128x32xf32, #tpu.memory_space<vmem>>, vector<128x32xf32>
    %c0_1 = arith.constant 0 : index
    %c0_2 = arith.constant 0 : index
    %1 = vector.load %arg2[%c0_1, %c0_2] : memref<32x128xf32, #tpu.memory_space<vmem>>, vector<32x128xf32>
    %cst = arith.constant dense<0.000000e+00> : vector<128x128xf32>
    %2 = tpu.matmul %0, %1, %cst {dimension_numbers = #tpu.dot_dimension_numbers<[1], [0], [0], [1], [0, 0, 1, 1], [], []>} : vector<128x32xf32>, vector<32x128xf32>, vector<128x128xf32> -> vector<128x128xf32>
    %c0_3 = arith.constant 0 : index
    %c0_4 = arith.constant 0 : index
    %3 = vector.load %arg3[%c0_3, %c0_4] : memref<128x128xf32, #tpu.memory_space<vmem>>, vector<128x128xf32>
    tpu.vector_store %arg3[%c0_3, %c0_4], %2 {strides = array<i32>} : memref<128x128xf32, #tpu.memory_space<vmem>>, vector<128x128xf32>,
    return
  }
  func.func @transform_0(%arg0: i32) -> (i32, i32) {
    %c0_i32 = arith.constant 0 : i32
    %c0_i32_0 = arith.constant 0 : i32
    return %arg0, %c0_i32 : i32, i32
  }
  func.func @transform_1(%arg0: i32) -> (i32, i32) {
    %c0_i32 = arith.constant 0 : i32
    %c0_i32_0 = arith.constant 0 : i32
    %c0_i32_1 = arith.constant 0 : i32
    return %c0_i32, %c0_i32_0 : i32, i32
  }
  func.func @transform_2(%arg0: i32) -> (i32, i32) {
    %c0_i32 = arith.constant 0 : i32
    %c0_i32_0 = arith.constant 0 : i32
    return %arg0, %c0_i32 : i32, i32
  }
}

</mosaic_0001>

<bundles_post_ra>
// kernel: tpu_custom_call.1
= control target key start
LH: loop header
LB: loop body
LE: loop exit
PB: predicated region body
PF: predicated region fallthrough
CT: control target
= control target key end

     0   :  { %vm32_vm0 = vcmask 261120   ;;  %s334_s0 = inlined_call_operand.vmem [shape: f32[128,32], index: 0, kind: input, shape index: {}]   ;;  %s335_s1 = inlined_call_operand.vmem [shape: f32[32,128], index: 1, kind: input, shape index: {}]   ;;  %s336_s2 = inlined_call_operand.hbm [shape: f32[128,128], index: 2, kind: output, shape index: {}]  }
   0x1   :  { %v31_v0 = vld [vmem:[%s335_s1 + $0x18] sm:$0xff]  ;;  %v30_v1 = vld [vmem:[%s335_s1 + $0x10] sm:$0xff]  ;;  %v29_v2 = vld [vmem:[%s335_s1 + $0x8] sm:$0xff] }
   0x2   :  { %197 = vmatpush.msra.mxu2 %v31_v0  ;;  %198 = vmatpush.msra.mxu3 %v31_v0  ;;  %v28_v3 = vld [vmem:[%s335_s1] sm:$0xff] }
   0x3   :  { %93 = vmatpush.msra.mxu0 %v31_v0  ;;  %196 = vmatpush.msra.mxu1 %v31_v0  ;;  %v20_v4 = vld [vmem:[%s334_s0 + $0x40] sm:$0xff] }
   0x4   :  { %200 = vmatpush.msra.mxu2 %v30_v1  ;;  %201 = vmatpush.msra.mxu3 %v30_v1  ;;  %v24_v5 = vld [vmem:[%s334_s0 + $0x60] sm:$0xff] }
   0x5   :  { %94 = vmatpush.msra.mxu0 %v30_v1  ;;  %199 = vmatpush.msra.mxu1 %v30_v1 }
   0x6   :  { %203 = vmatpush.msra.mxu2 %v29_v2  ;;  %204 = vmatpush.msra.mxu3 %v29_v2 }
   0x7   :  { %95 = vmatpush.msra.mxu0 %v29_v2  ;;  %202 = vmatpush.msra.mxu1 %v29_v2 }
   0x8   :  { %7 = vsyncpa [#allocation3], 0  ;;  %206 = vmatpush.msra.mxu2 %v28_v3  ;;  %207 = vmatpush.msra.mxu3 %v28_v3  ;;  %v12_v6 = vld [vmem:[%s334_s0] sm:$0xff]  ;;  %v21_v8 = vld [vmem:[%s334_s0 + $0x48] sm:$0xff]  ;;  %s168_s22 = sshll.u32 %s336_s2, 4  ;;  %s238_s23 = smov 128   ;;  %s169_s22 = int_to_ptr.hbm [resolvable:$true] %s168_s22 }
   0x9   :  { %v16_v7 = vld [vmem:[%s334_s0 + $0x20] sm:$0xff]  ;;  %188 = vmatmul.msk.f32.vlgmr.msra.gmra.mxu2 %vm32_vm0, %v20_v4  ;;  %192 = vmatmul.msk.f32.vlgmr.msra.gmra.mxu3 %vm32_vm0, %v24_v5  ;;  %v25_v9 = vld [vmem:[%s334_s0 + $0x68] sm:$0xff]  ;;  %v22_v12 = vld [vmem:[%s334_s0 + $0x50] sm:$0xff]  ;;  %s239_s24 = smov 8  }
   0xa   :  { %96 = vmatpush.msra.mxu0 %v28_v3  ;;  %205 = vmatpush.msra.mxu1 %v28_v3  ;;  %v13_v10 = vld [vmem:[%s334_s0 + $0x8] sm:$0xff]  ;;  %v26_v13 = vld [vmem:[%s334_s0 + $0x70] sm:$0xff]  ;;  %v23_v16 = vld [vmem:[%s334_s0 + $0x58] sm:$0xff] }
   0xb   :  { %180 = vmatmul.msk.f32.vlgmr.msra.gmra.mxu0 %vm32_vm0, %v12_v6  ;;  %184 = vmatmul.msk.f32.vlgmr.msra.gmra.mxu1 %vm32_vm0, %v16_v7  ;;  %v17_v11 = vld [vmem:[%s334_s0 + $0x28] sm:$0xff]  ;;  %v14_v14 = vld [vmem:[%s334_s0 + $0x10] sm:$0xff]  ;;  %v27_v17 = vld [vmem:[%s334_s0 + $0x78] sm:$0xff] }
   0xc   :  { %v18_v15 = vld [vmem:[%s334_s0 + $0x30] sm:$0xff]  ;;  %v15_v18 = vld [vmem:[%s334_s0 + $0x18] sm:$0xff] }
   0xd   :  { %v19_v19 = vld [vmem:[%s334_s0 + $0x38] sm:$0xff]  ;;  %s237_s0 = smov [#allocation2]  }
   0xe   :  { %s166_s20 = sshll.u32 %s237_s0, 4  ;;  %s167_s20 = int_to_ptr.vmem [resolvable:$true] %s166_s20 }
  0x11   :  { %189 = vmatmul.msk.f32.gmra.mxu2 %vm32_vm0, %v21_v8  ;;  %193 = vmatmul.msk.f32.gmra.mxu3 %vm32_vm0, %v25_v9 }
  0x13   :  { %181 = vmatmul.msk.f32.gmra.mxu0 %vm32_vm0, %v13_v10  ;;  %185 = vmatmul.msk.f32.gmra.mxu1 %vm32_vm0, %v17_v11 }
  0x19   :  { %190 = vmatmul.msk.f32.gmra.mxu2 %vm32_vm0, %v22_v12  ;;  %194 = vmatmul.msk.f32.gmra.mxu3 %vm32_vm0, %v26_v13 }
  0x1b   :  { %182 = vmatmul.msk.f32.gmra.mxu0 %vm32_vm0, %v14_v14  ;;  %186 = vmatmul.msk.f32.gmra.mxu1 %vm32_vm0, %v18_v15 }
  0x21   :  { %191 = vmatmul.msk.f32.gmra.mxu2 %vm32_vm0, %v23_v16  ;;  %195 = vmatmul.msk.f32.gmra.mxu3 %vm32_vm0, %v27_v17 }
  0x23   :  { %183 = vmatmul.msk.f32.gmra.mxu0 %vm32_vm0, %v15_v18  ;;  %187 = vmatmul.msk.f32.gmra.mxu1 %vm32_vm0, %v19_v19 }
  0x88   :  { %v98_v20 = vpop.f32.mrf.mxu0  ;;  %v110_v21 = vpop.f32.mrf.mxu1 }
  0x89   :  { %146 = vst [vmem:[#allocation2] sm:$0xff] %v98_v20 }
  0x8a   :  { %150 = vst [vmem:[#allocation2 + $0x20] sm:$0xff] %v110_v21 }
  0x8c   :  { %v122_v22 = vpop.f32.mrf.mxu2  ;;  %v134_v23 = vpop.f32.mrf.mxu3 }
  0x8d   :  { %154 = vst [vmem:[#allocation2 + $0x40] sm:$0xff] %v122_v22 }
  0x8e   :  { %158 = vst [vmem:[#allocation2 + $0x60] sm:$0xff] %v134_v23 }
  0x90   :  { %v101_v24 = vpop.f32.mrf.mxu0  ;;  %v113_v25 = vpop.f32.mrf.mxu1 }
  0x91   :  { %147 = vst [vmem:[#allocation2 + $0x8] sm:$0xff] %v101_v24 }
  0x92   :  { %151 = vst [vmem:[#allocation2 + $0x28] sm:$0xff] %v113_v25 }
  0x94   :  { %v125_v26 = vpop.f32.mrf.mxu2  ;;  %v137_v27 = vpop.f32.mrf.mxu3 }
  0x95   :  { %155 = vst [vmem:[#allocation2 + $0x48] sm:$0xff] %v125_v26 }
  0x96   :  { %159 = vst [vmem:[#allocation2 + $0x68] sm:$0xff] %v137_v27 }
  0x98   :  { %v104_v28 = vpop.f32.mrf.mxu0  ;;  %v116_v29 = vpop.f32.mrf.mxu1 }
  0x99   :  { %148 = vst [vmem:[#allocation2 + $0x10] sm:$0xff] %v104_v28 }
  0x9a   :  { %152 = vst [vmem:[#allocation2 + $0x30] sm:$0xff] %v116_v29 }
  0x9c   :  { %v128_v30 = vpop.f32.mrf.mxu2  ;;  %v140_v31 = vpop.f32.mrf.mxu3 }
  0x9d   :  { %156 = vst [vmem:[#allocation2 + $0x50] sm:$0xff] %v128_v30 }
  0x9e   :  { %160 = vst [vmem:[#allocation2 + $0x70] sm:$0xff] %v140_v31 }
  0xa0   :  { %v107_v32 = vpop.f32.mrf.mxu0  ;;  %v119_v33 = vpop.f32.mrf.mxu1 }
  0xa1   :  { %149 = vst [vmem:[#allocation2 + $0x18] sm:$0xff] %v107_v32 }
  0xa2   :  { %153 = vst [vmem:[#allocation2 + $0x38] sm:$0xff] %v119_v33 }
  0xa4   :  { %v131_v34 = vpop.f32.mrf.mxu2  ;;  %v143_v35 = vpop.f32.mrf.mxu3 }
  0xa5   :  { %157 = vst [vmem:[#allocation2 + $0x58] sm:$0xff] %v131_v34 }
  0xa6   :  { %161 = vst [vmem:[#allocation2 + $0x78] sm:$0xff] %v143_v35 }
  0xa7   :  { %174 = dma.vmem_to_hbm [thread:$0]  %s167_s20, 2048, %s169_s22, [#allocation3], %s238_s23, %s238_s23, %s239_s24  }
  0xa8   :  { %235 = dma.done.wait [#allocation3], 2048  }
  0xa9   :  { %236 = vsyncadd [#allocation3], 4294965248 }
  0xaa   :  { %179 = vsyncpa [#allocation3], 1 }

</bundles_post_ra>
